<compile_context>
chip_gen: v6e
topology: v6e:2x2x1
jax: 0.10.0
libtpu: 0.0.40
codegen_flags: <defaults>
</compile_context>

<pallas_src>
import jax
import jax.numpy as jnp
from jax.experimental import pallas as pl
from jax.experimental.pallas import tpu as pltpu


# ----------------------------------------------------------------------------
# Fused kernel: one grid step == K segments (recurrent memory in VMEM scratch)
# ----------------------------------------------------------------------------
def _make_rmt_kernel(B, S, K, M, H, V, with_hs):
    KS = K * S

    def kernel(emb_ref, lab_ref, msk_ref, mem0_ref, w1_ref, w2_ref, wlm_ref, *refs):
        if with_hs:
            logits_ref, hs_ref, loss_ref, mem_scr = refs
        else:
            logits_ref, loss_ref, mem_scr = refs
            hs_ref = None

        g = pl.program_id(0)

        @pl.when(g == 0)
        def _init():
            # zero_mem(): reset recurrent state to the learned memory tokens and
            # zero the cross-entropy accumulator.
            mem_scr[...] = mem0_ref[...]
            loss_ref[...] = jnp.zeros_like(loss_ref)

        w1 = w1_ref[...]      # bf16 weights, VMEM-resident across all grid steps
        w2 = w2_ref[...]
        wlm = wlm_ref[...]

        # --------------------------------------------------------------------
        # Heavy token path: all K segments of this block fused into single MXU
        # dots (B*K*S-row LHS).  Valid because the synthetic memory cell is a
        # row-wise MLP: token rows never read memory rows.
        # --------------------------------------------------------------------
        emb_rows = emb_ref[...].reshape(B * KS, H)                       # bf16
        h1 = jnp.tanh(jnp.dot(emb_rows, w1, preferred_element_type=jnp.float32))
        hid = jnp.dot(h1.astype(jnp.bfloat16), w2, preferred_element_type=jnp.float32)
        if with_hs:
            hs_ref[...] = hid.reshape(B, KS, H).astype(hs_ref.dtype)     # bf16 writeback
        logits = jnp.dot(hid.astype(jnp.bfloat16), wlm, preferred_element_type=jnp.float32)
        logits3 = logits.reshape(B, KS, V)
        logits_ref[...] = logits3.astype(logits_ref.dtype)               # bf16 writeback

        # --------------------------------------------------------------------
        # Fused masked cross-entropy partial sum (f32) while the logits are
        # still on-chip (no second HBM read of the [N, V] logits).
        # TODO(synk): chunk the vocab axis (running max/sum) if V grows large.
        # --------------------------------------------------------------------
        mx = jnp.max(logits3, axis=-1, keepdims=True)                    # (B, KS, 1)
        lse = mx[..., 0] + jnp.log(jnp.sum(jnp.exp(logits3 - mx), axis=-1))   # (B, KS)
        labels = lab_ref[0]                                              # (B, KS) i32
        vocab_ids = jax.lax.broadcasted_iota(jnp.int32, (B, KS, V), 2)
        # NOTE: out-of-range label ids silently give label_logit = 0; padded
        # last-position label 0 is safe only because its mask entry is 0.
        label_logit = jnp.sum(jnp.where(vocab_ids == labels[:, :, None], logits3, 0.0),
                              axis=-1)                                   # (B, KS)
        mask = msk_ref[0]                                                # (B, KS) f32
        per_tok = (lse - label_logit) * mask                             # (B, KS)
        partial = jnp.sum(jnp.sum(per_tok, axis=1, keepdims=True),
                          axis=0, keepdims=True)                         # (1, 1)
        loss_ref[...] += partial

        # --------------------------------------------------------------------
        # Tiny recurrent memory carry across the K sub-segments (sequential,
        # B*M rows per step).  Output-invisible for this synthetic row-wise
        # cell but kept for RMT structural fidelity; cost is negligible.
        # --------------------------------------------------------------------
        mem = mem_scr[...].reshape(B * M, H)
        for _ in range(K):                                  # static unrolled loop
            h1m = jnp.tanh(jnp.dot(mem.astype(jnp.bfloat16), w1,
                                   preferred_element_type=jnp.float32))
            mem = jnp.dot(h1m.astype(jnp.bfloat16), w2,
                          preferred_element_type=jnp.float32)
        mem_scr[...] = mem.reshape(B, M, H)

    return kernel


def rmt_forward_fused(embeds_bf16, labels_blk, mask_blk, mem0_b, w1, w2, wlm, *,
                      segment_size, segs_per_block, output_hidden_states):
    B, L, H = embeds_bf16.shape
    V = wlm.shape[1]
    M = mem0_b.shape[1]
    S = segment_size
    K = segs_per_block
    KS = K * S
    n_seg = L // S
    n_blocks = n_seg // K

    kernel = _make_rmt_kernel(B, S, K, M, H, V, output_hidden_states)

    in_specs = [
        pl.BlockSpec((B, KS, H), lambda g: (0, g, 0)),   # embeddings, K segments / step
        pl.BlockSpec((1, B, KS), lambda g: (g, 0, 0)),   # shifted labels (lane-dense)
        pl.BlockSpec((1, B, KS), lambda g: (g, 0, 0)),   # shifted mask   (lane-dense)
        pl.BlockSpec((B, M, H), lambda g: (0, 0, 0)),    # mem0 (VMEM-resident)
        pl.BlockSpec((H, H), lambda g: (0, 0)),          # W1   (VMEM-resident)
        pl.BlockSpec((H, H), lambda g: (0, 0)),          # W2   (VMEM-resident)
        pl.BlockSpec((H, V), lambda g: (0, 0)),          # Wlm  (VMEM-resident)
    ]
    out_specs = [pl.BlockSpec((B, KS, V), lambda g: (0, g, 0))]          # logits (bf16)
    out_shapes = [jax.ShapeDtypeStruct((B, L, V), jnp.bfloat16)]
    if output_hidden_states:
        out_specs.append(pl.BlockSpec((B, KS, H), lambda g: (0, g, 0)))  # hidden (bf16)
        out_shapes.append(jax.ShapeDtypeStruct((B, L, H), jnp.bfloat16))
    # Scalar CE loss accumulator: single (1,1) f32 tile, resident across the grid.
    out_specs.append(pl.BlockSpec((1, 1), lambda g: (0, 0)))
    out_shapes.append(jax.ShapeDtypeStruct((1, 1), jnp.float32))

    # Approximate cost for XLA's scheduler.
    flops = n_seg * (4 * B * S * H * H + 2 * B * S * H * V + 4 * B * M * H * H)
    transcendentals = n_seg * (B * S * (H + V) + B * M * H)
    bytes_accessed = (B * L * H * 2 + B * L * 8                     # embeds + labels/mask
                      + (2 * H * H + H * V) * 2 + B * M * H * 4     # weights (once) + mem0
                      + B * L * V * 2                               # bf16 logits out
                      + (B * L * H * 2 if output_hidden_states else 0) + 4)

    # VMEM budget derived from block sizes; capped for v7x's 64 MiB physical VMEM.
    blk_bytes = (2 * B * KS * H * 2 + 2 * B * KS * 8 + 2 * B * KS * V * 2
                 + (2 * B * KS * H * 2 if output_hidden_states else 0)
                 + (2 * H * H + H * V) * 2 + 2 * B * M * H * 4
                 + B * KS * (2 * H + V) * 4)
    vmem_limit = int(min(56 * 1024 * 1024, max(32 * 1024 * 1024, 2 * blk_bytes)))

    grid_spec = pltpu.PrefetchScalarGridSpec(
        num_scalar_prefetch=0,
        grid=(n_blocks,),
        in_specs=in_specs,
        out_specs=out_specs,
        scratch_shapes=[pltpu.VMEM((B, M, H), jnp.float32)],   # recurrent memory carry
    )

    return pl.pallas_call(
        kernel,
        grid_spec=grid_spec,
        out_shape=tuple(out_shapes),
        compiler_params=pltpu.CompilerParams(
            dimension_semantics=("arbitrary",),     # memory + loss carried across blocks
            vmem_limit_bytes=vmem_limit,
        ),
        cost_estimate=pl.CostEstimate(
            flops=flops, transcendentals=transcendentals, bytes_accessed=bytes_accessed),
    )(embeds_bf16, labels_blk, mask_blk, mem0_b, w1, w2, wlm)


def _pick_segs_per_block(n_seg, B, S, target_rows=512):
    """Largest K dividing n_seg such that B*K*S stays near target MXU LHS rows."""
    k_max = max(1, min(n_seg, max(1, target_rows // max(1, B * S))))
    for k in range(k_max, 0, -1):
        if n_seg % k == 0:
            return k
    return 1


# ----------------------------------------------------------------------------
# Synthetic memory cell params + RecurrentWrapper forward (glue in plain JAX)
# ----------------------------------------------------------------------------
class MemoryCellParams:
    def __init__(self, key, vocab, hidden, num_mem_tokens):
        k1, k2, k3, k4, k5 = jax.random.split(key, 5)
        s = 1.0 / jnp.sqrt(hidden)
        self.embed = jax.random.normal(k1, (vocab, hidden), jnp.float32) * s
        self.mem0 = jax.random.normal(k2, (num_mem_tokens, hidden), jnp.float32) * s
        # Weights stored bf16 once: half the resident VMEM bytes, full-rate bf16 MXU;
        # accumulation stays f32 inside the kernel.
        self.w1 = (jax.random.normal(k3, (hidden, hidden), jnp.float32) * s).astype(jnp.bfloat16)
        self.w2 = (jax.random.normal(k4, (hidden, hidden), jnp.float32) * s).astype(jnp.bfloat16)
        self.wlm = (jax.random.normal(k5, (hidden, vocab), jnp.float32) * s).astype(jnp.bfloat16)
        self.num_mem_tokens = num_mem_tokens
        self.hidden = hidden
        self.vocab = vocab


def recurrent_wrapper_forward(params, input_ids, labels=None, labels_mask=None,
                              segment_size=16, output_hidden_states=False):
    B, L = input_ids.shape
    S = segment_size
    # TODO(synk): ragged last segment (left/right/center alignment when
    # L % segment_size != 0) is not handled by the fused grid kernel.
    assert L % S == 0, "fused RMT kernel requires L to be a multiple of segment_size"
    M, H, V = params.num_mem_tokens, params.hidden, params.vocab
    n_seg = L // S
    K = _pick_segs_per_block(n_seg, B, S)
    n_blocks = n_seg // K

    # Embedding gather once for the whole sequence (layer-0 hidden states).
    embeds_f32 = jnp.take(params.embed, input_ids, axis=0)          # [B, L, H]
    embeds_bf16 = embeds_f32.astype(jnp.bfloat16)

    # Shift convention (matches the PyTorch reference exactly):
    #   position t is scored against labels[t+1] with mask labels_mask[t]
    #   (reference: shift_logits = logits[:, :-1], shift_labels = labels[:, 1:],
    #    shift_mask = labels_mask[:, :-1]); position L-1 is dropped -> mask 0.
    if labels is not None:
        shift_labels = jnp.concatenate(
            [labels[:, 1:], jnp.zeros((B, 1), labels.dtype)], axis=1).astype(jnp.int32)
        if labels_mask is not None:
            base_mask = labels_mask.astype(jnp.float32)
        else:
            base_mask = jnp.ones((B, L), jnp.float32)
        eff_mask = base_mask.at[:, L - 1].set(0.0)
    else:
        shift_labels = jnp.zeros((B, L), jnp.int32)
        eff_mask = jnp.zeros((B, L), jnp.float32)

    # Fold labels / mask into the K-segment block layout: (n_blocks, B, K*S).
    labels_blk = shift_labels.reshape(B, n_blocks, K * S).transpose(1, 0, 2)
    mask_blk = eff_mask.reshape(B, n_blocks, K * S).transpose(1, 0, 2)

    mem0_b = jnp.broadcast_to(params.mem0[None], (B, M, H)).astype(jnp.float32)

    outs = rmt_forward_fused(
        embeds_bf16, labels_blk, mask_blk, mem0_b,
        params.w1, params.w2, params.wlm,
        segment_size=S, segs_per_block=K, output_hidden_states=output_hidden_states)

    if output_hidden_states:
        full_logits, hs_tok, loss_sum = outs
    else:
        full_logits, loss_sum = outs
        hs_tok = None

    out = {}
    if labels is not None:
        # Boolean-select + mean in the reference == masked sum / count here.
        denom = jnp.maximum(jnp.sum(eff_mask), 1.0)
        out["loss"] = loss_sum[0, 0] / denom
    else:
        out["loss"] = jnp.float32(0.0)
    out["ce_loss"] = out["loss"]
    out["logits"] = full_logits
    if output_hidden_states:
        out["hidden_states"] = (embeds_f32, hs_tok)
    for i in range(n_seg):
        out[f"logits_{i}"] = full_logits[:, i * S:(i + 1) * S]
    return out


# ----------------------------------------------------------------------------
if __name__ == "__main__":
    VOCAB = 256
    HIDDEN = 128
    NUM_MEM = 8
    SEG_SIZE = 16
    BATCH = 2
    TOTAL_LEN = 32   # -> 2 segments, processed as one fused K=2 block

    key = jax.random.PRNGKey(0)
    k_param, k_ids = jax.random.split(key)
    params = MemoryCellParams(k_param, VOCAB, HIDDEN, NUM_MEM)

    input_ids = jax.random.randint(k_ids, (BATCH, TOTAL_LEN), 0, VOCAB, dtype=jnp.int32)
    labels = input_ids
    labels_mask = jnp.ones((BATCH, TOTAL_LEN), dtype=jnp.bool_)

    out = recurrent_wrapper_forward(
        params, input_ids, labels=labels, labels_mask=labels_mask,
        segment_size=SEG_SIZE, output_hidden_states=True,
    )
    jax.block_until_ready(out["loss"])
    jax.block_until_ready(out["logits"])

    assert out["logits"].shape == (BATCH, TOTAL_LEN, VOCAB)
    assert out["logits_0"].shape == (BATCH, SEG_SIZE, VOCAB)
    assert out["hidden_states"][1].shape == (BATCH, TOTAL_LEN, HIDDEN)
    assert bool(jnp.isfinite(out["loss"]))
    print("KERNEL_OK")
</pallas_src>

<mosaic_0001>
module attributes {stable_mosaic.version = 11 : i64} {
  func.func @kernel(%arg0: i32, %arg1: memref<2x32x128xbf16, #tpu.memory_space<vmem>>, %arg2: memref<1x2x32xi32, #tpu.memory_space<vmem>>, %arg3: memref<1x2x32xf32, #tpu.memory_space<vmem>>, %arg4: memref<2x8x128xf32, #tpu.memory_space<vmem>>, %arg5: memref<128x128xbf16, #tpu.memory_space<vmem>>, %arg6: memref<128x128xbf16, #tpu.memory_space<vmem>>, %arg7: memref<128x256xbf16, #tpu.memory_space<vmem>>, %arg8: memref<2x32x256xbf16, #tpu.memory_space<vmem>>, %arg9: memref<2x32x128xbf16, #tpu.memory_space<vmem>>, %arg10: memref<1x1xf32, #tpu.memory_space<vmem>>, %arg11: memref<2x8x128xf32, #tpu.memory_space<vmem>>) attributes {dimension_semantics = [#tpu.dimension_semantics<arbitrary>], iteration_bounds = array<i64: 1>, scalar_prefetch = 0 : i64, scratch_operands = 1 : i64, tpu.core_type = #tpu.core_type<tc>, window_params = [{transform_indices = @transform_0, window_bounds = array<i64: 2, 32, 128>}, {transform_indices = @transform_1, window_bounds = array<i64: 1, 2, 32>}, {transform_indices = @transform_2, window_bounds = array<i64: 1, 2, 32>}, {pipeline_mode = #tpu.pipeline_mode<synchronous>, transform_indices = @transform_3, window_bounds = array<i64: 2, 8, 128>}, {pipeline_mode = #tpu.pipeline_mode<synchronous>, transform_indices = @transform_4, window_bounds = array<i64: 128, 128>}, {pipeline_mode = #tpu.pipeline_mode<synchronous>, transform_indices = @transform_5, window_bounds = array<i64: 128, 128>}, {pipeline_mode = #tpu.pipeline_mode<synchronous>, transform_indices = @transform_6, window_bounds = array<i64: 128, 256>}, {transform_indices = @transform_7, window_bounds = array<i64: 2, 32, 256>}, {transform_indices = @transform_8, window_bounds = array<i64: 2, 32, 128>}, {pipeline_mode = #tpu.pipeline_mode<synchronous>, transform_indices = @transform_9, window_bounds = array<i64: 1, 1>}]} {
    %c0_i32 = arith.constant 0 : i32
    %0 = arith.cmpi eq, %arg0, %c0_i32 : i32
    %1 = arith.extui %0 : i1 to i32
    %c0_i32_0 = arith.constant 0 : i32
    %2 = arith.cmpi ne, %1, %c0_i32_0 : i32
    scf.if %2 {
      %c0_43 = arith.constant 0 : index
      %c0_44 = arith.constant 0 : index
      %c0_45 = arith.constant 0 : index
      %63 = vector.load %arg4[%c0_43, %c0_44, %c0_45] : memref<2x8x128xf32, #tpu.memory_space<vmem>>, vector<2x8x128xf32>
      %c0_46 = arith.constant 0 : index
      %c0_47 = arith.constant 0 : index
      %c0_48 = arith.constant 0 : index
      %64 = vector.load %arg11[%c0_46, %c0_47, %c0_48] : memref<2x8x128xf32, #tpu.memory_space<vmem>>, vector<2x8x128xf32>
      tpu.vector_store %arg11[%c0_46, %c0_47, %c0_48], %63 {strides = array<i32>} : memref<2x8x128xf32, #tpu.memory_space<vmem>>, vector<2x8x128xf32>,
      %cst_49 = arith.constant 0.000000e+00 : f32
      %65 = vector.broadcast %cst_49 : f32 to vector<1x1xf32>
      %c0_50 = arith.constant 0 : index
      %c0_51 = arith.constant 0 : index
      %66 = vector.load %arg10[%c0_50, %c0_51] : memref<1x1xf32, #tpu.memory_space<vmem>>, vector<1x1xf32>
      tpu.vector_store %arg10[%c0_50, %c0_51], %65 {strides = array<i32>} : memref<1x1xf32, #tpu.memory_space<vmem>>, vector<1x1xf32>,
    } else {
    }
    %c0 = arith.constant 0 : index
    %c0_1 = arith.constant 0 : index
    %3 = vector.load %arg5[%c0, %c0_1] : memref<128x128xbf16, #tpu.memory_space<vmem>>, vector<128x128xbf16>
    %c0_2 = arith.constant 0 : index
    %c0_3 = arith.constant 0 : index
    %4 = vector.load %arg6[%c0_2, %c0_3] : memref<128x128xbf16, #tpu.memory_space<vmem>>, vector<128x128xbf16>
    %c0_4 = arith.constant 0 : index
    %c0_5 = arith.constant 0 : index
    %5 = vector.load %arg7[%c0_4, %c0_5] : memref<128x256xbf16, #tpu.memory_space<vmem>>, vector<128x256xbf16>
    %c0_6 = arith.constant 0 : index
    %c0_7 = arith.constant 0 : index
    %c0_8 = arith.constant 0 : index
    %6 = vector.load %arg1[%c0_6, %c0_7, %c0_8] : memref<2x32x128xbf16, #tpu.memory_space<vmem>>, vector<2x32x128xbf16>
    %7 = vector.shape_cast %6 : vector<2x32x128xbf16> to vector<64x128xbf16>
    %cst = arith.constant dense<0.000000e+00> : vector<64x128xf32>
    %8 = tpu.matmul %7, %3, %cst {dimension_numbers = #tpu.dot_dimension_numbers<[1], [0], [0], [1], [0, 0, 1, 1], [], []>} : vector<64x128xbf16>, vector<128x128xbf16>, vector<64x128xf32> -> vector<64x128xf32>
    %9 = math.tanh %8 : vector<64x128xf32>
    %10 = arith.truncf %9 : vector<64x128xf32> to vector<64x128xbf16>
    %cst_9 = arith.constant dense<0.000000e+00> : vector<64x128xf32>
    %11 = tpu.matmul %10, %4, %cst_9 {dimension_numbers = #tpu.dot_dimension_numbers<[1], [0], [0], [1], [0, 0, 1, 1], [], []>} : vector<64x128xbf16>, vector<128x128xbf16>, vector<64x128xf32> -> vector<64x128xf32>
    %12 = vector.shape_cast %11 : vector<64x128xf32> to vector<2x32x128xf32>
    %13 = arith.truncf %12 : vector<2x32x128xf32> to vector<2x32x128xbf16>
    %c0_10 = arith.constant 0 : index
    %c0_11 = arith.constant 0 : index
    %c0_12 = arith.constant 0 : index
    %14 = vector.load %arg9[%c0_10, %c0_11, %c0_12] : memref<2x32x128xbf16, #tpu.memory_space<vmem>>, vector<2x32x128xbf16>
    tpu.vector_store %arg9[%c0_10, %c0_11, %c0_12], %13 {strides = array<i32>} : memref<2x32x128xbf16, #tpu.memory_space<vmem>>, vector<2x32x128xbf16>,
    %15 = arith.truncf %11 : vector<64x128xf32> to vector<64x128xbf16>
    %cst_13 = arith.constant dense<0.000000e+00> : vector<64x256xf32>
    %16 = tpu.matmul %15, %5, %cst_13 {dimension_numbers = #tpu.dot_dimension_numbers<[1], [0], [0], [1], [0, 0, 1, 1], [], []>} : vector<64x128xbf16>, vector<128x256xbf16>, vector<64x256xf32> -> vector<64x256xf32>
    %17 = vector.shape_cast %16 : vector<64x256xf32> to vector<2x32x256xf32>
    %18 = arith.truncf %17 : vector<2x32x256xf32> to vector<2x32x256xbf16>
    %c0_14 = arith.constant 0 : index
    %c0_15 = arith.constant 0 : index
    %c0_16 = arith.constant 0 : index
    %19 = vector.load %arg8[%c0_14, %c0_15, %c0_16] : memref<2x32x256xbf16, #tpu.memory_space<vmem>>, vector<2x32x256xbf16>
    tpu.vector_store %arg8[%c0_14, %c0_15, %c0_16], %18 {strides = array<i32>} : memref<2x32x256xbf16, #tpu.memory_space<vmem>>, vector<2x32x256xbf16>,
    %cst_17 = arith.constant dense<0xFF800000> : vector<2x32xf32>
    %20 = vector.multi_reduction <maximumf>, %17, %cst_17 [2] : vector<2x32x256xf32> to vector<2x32xf32>
    %21 = vector.shape_cast %20 : vector<2x32xf32> to vector<2x32x1xf32>
    %22 = vector.shape_cast %21 : vector<2x32x1xf32> to vector<2x32xf32>
    %23 = vector.broadcast %21 : vector<2x32x1xf32> to vector<2x32x256xf32>
    %24 = arith.subf %17, %23 : vector<2x32x256xf32>
    %25 = math.exp %24 : vector<2x32x256xf32>
    %cst_18 = arith.constant dense<0.000000e+00> : vector<2x32xf32>
    %26 = vector.multi_reduction <add>, %25, %cst_18 [2] : vector<2x32x256xf32> to vector<2x32xf32>
    %27 = math.log %26 : vector<2x32xf32>
    %28 = arith.addf %22, %27 : vector<2x32xf32>
    %c0_19 = arith.constant 0 : index
    %c0_20 = arith.constant 0 : index
    %c0_21 = arith.constant 0 : index
    %29 = vector.load %arg2[%c0_19, %c0_20, %c0_21] : memref<1x2x32xi32, #tpu.memory_space<vmem>>, vector<1x2x32xi32>
    %30 = vector.shape_cast %29 : vector<1x2x32xi32> to vector<2x32xi32>
    %31 = tpu.iota {dimensions = array<i32: 2>} : vector<2x32x256xi32>
    %32 = vector.shape_cast %30 : vector<2x32xi32> to vector<2x32x1xi32>
    %33 = vector.broadcast %32 : vector<2x32x1xi32> to vector<2x32x256xi32>
    %34 = arith.cmpi eq, %31, %33 : vector<2x32x256xi32>
    %cst_22 = arith.constant 0.000000e+00 : f32
    %35 = vector.broadcast %cst_22 : f32 to vector<2x32x256xf32>
    %36 = arith.select %34, %17, %35 : vector<2x32x256xi1>, vector<2x32x256xf32>
    %cst_23 = arith.constant dense<0.000000e+00> : vector<2x32xf32>
    %37 = vector.multi_reduction <add>, %36, %cst_23 [2] : vector<2x32x256xf32> to vector<2x32xf32>
    %c0_24 = arith.constant 0 : index
    %c0_25 = arith.constant 0 : index
    %c0_26 = arith.constant 0 : index
    %38 = vector.load %arg3[%c0_24, %c0_25, %c0_26] : memref<1x2x32xf32, #tpu.memory_space<vmem>>, vector<1x2x32xf32>
    %39 = vector.shape_cast %38 : vector<1x2x32xf32> to vector<2x32xf32>
    %40 = arith.subf %28, %37 : vector<2x32xf32>
    %41 = arith.mulf %40, %39 : vector<2x32xf32>
    %cst_27 = arith.constant dense<0.000000e+00> : vector<2xf32>
    %42 = vector.multi_reduction <add>, %41, %cst_27 [1] : vector<2x32xf32> to vector<2xf32>
    %43 = vector.shape_cast %42 : vector<2xf32> to vector<2x1xf32>
    %cst_28 = arith.constant dense<0.000000e+00> : vector<1xf32>
    %44 = vector.multi_reduction <add>, %43, %cst_28 [0] : vector<2x1xf32> to vector<1xf32>
    %45 = vector.shape_cast %44 : vector<1xf32> to vector<1x1xf32>
    %c0_29 = arith.constant 0 : index
    %c0_30 = arith.constant 0 : index
    %46 = vector.load %arg10[%c0_29, %c0_30] : memref<1x1xf32, #tpu.memory_space<vmem>>, vector<1x1xf32>
    %47 = arith.addf %46, %45 : vector<1x1xf32>
    %c0_31 = arith.constant 0 : index
    %c0_32 = arith.constant 0 : index
    %48 = vector.load %arg10[%c0_31, %c0_32] : memref<1x1xf32, #tpu.memory_space<vmem>>, vector<1x1xf32>
    tpu.vector_store %arg10[%c0_31, %c0_32], %47 {strides = array<i32>} : memref<1x1xf32, #tpu.memory_space<vmem>>, vector<1x1xf32>,
    %c0_33 = arith.constant 0 : index
    %c0_34 = arith.constant 0 : index
    %c0_35 = arith.constant 0 : index
    %49 = vector.load %arg11[%c0_33, %c0_34, %c0_35] : memref<2x8x128xf32, #tpu.memory_space<vmem>>, vector<2x8x128xf32>
    %50 = vector.shape_cast %49 : vector<2x8x128xf32> to vector<16x128xf32>
    %51 = arith.truncf %50 : vector<16x128xf32> to vector<16x128xbf16>
    %cst_36 = arith.constant dense<0.000000e+00> : vector<16x128xf32>
    %52 = tpu.matmul %51, %3, %cst_36 {dimension_numbers = #tpu.dot_dimension_numbers<[1], [0], [0], [1], [0, 0, 1, 1], [], []>} : vector<16x128xbf16>, vector<128x128xbf16>, vector<16x128xf32> -> vector<16x128xf32>
    %53 = math.tanh %52 : vector<16x128xf32>
    %54 = arith.truncf %53 : vector<16x128xf32> to vector<16x128xbf16>
    %cst_37 = arith.constant dense<0.000000e+00> : vector<16x128xf32>
    %55 = tpu.matmul %54, %4, %cst_37 {dimension_numbers = #tpu.dot_dimension_numbers<[1], [0], [0], [1], [0, 0, 1, 1], [], []>} : vector<16x128xbf16>, vector<128x128xbf16>, vector<16x128xf32> -> vector<16x128xf32>
    %56 = arith.truncf %55 : vector<16x128xf32> to vector<16x128xbf16>
    %cst_38 = arith.constant dense<0.000000e+00> : vector<16x128xf32>
    %57 = tpu.matmul %56, %3, %cst_38 {dimension_numbers = #tpu.dot_dimension_numbers<[1], [0], [0], [1], [0, 0, 1, 1], [], []>} : vector<16x128xbf16>, vector<128x128xbf16>, vector<16x128xf32> -> vector<16x128xf32>
    %58 = math.tanh %57 : vector<16x128xf32>
    %59 = arith.truncf %58 : vector<16x128xf32> to vector<16x128xbf16>
    %cst_39 = arith.constant dense<0.000000e+00> : vector<16x128xf32>
    %60 = tpu.matmul %59, %4, %cst_39 {dimension_numbers = #tpu.dot_dimension_numbers<[1], [0], [0], [1], [0, 0, 1, 1], [], []>} : vector<16x128xbf16>, vector<128x128xbf16>, vector<16x128xf32> -> vector<16x128xf32>
    %61 = vector.shape_cast %60 : vector<16x128xf32> to vector<2x8x128xf32>
    %c0_40 = arith.constant 0 : index
    %c0_41 = arith.constant 0 : index
    %c0_42 = arith.constant 0 : index
    %62 = vector.load %arg11[%c0_40, %c0_41, %c0_42] : memref<2x8x128xf32, #tpu.memory_space<vmem>>, vector<2x8x128xf32>
    tpu.vector_store %arg11[%c0_40, %c0_41, %c0_42], %61 {strides = array<i32>} : memref<2x8x128xf32, #tpu.memory_space<vmem>>, vector<2x8x128xf32>,
    return
  }
  func.func @transform_0(%arg0: i32) -> (i32, i32, i32) {
    %c0_i32 = arith.constant 0 : i32
    %c0_i32_0 = arith.constant 0 : i32
    %c0_i32_1 = arith.constant 0 : i32
    return %c0_i32, %arg0, %c0_i32_0 : i32, i32, i32
  }
  func.func @transform_1(%arg0: i32) -> (i32, i32, i32) {
    %c0_i32 = arith.constant 0 : i32
    %c0_i32_0 = arith.constant 0 : i32
    %c0_i32_1 = arith.constant 0 : i32
    return %arg0, %c0_i32, %c0_i32_0 : i32, i32, i32
  }
  func.func @transform_2(%arg0: i32) -> (i32, i32, i32) {
    %c0_i32 = arith.constant 0 : i32
    %c0_i32_0 = arith.constant 0 : i32
    %c0_i32_1 = arith.constant 0 : i32
    return %arg0, %c0_i32, %c0_i32_0 : i32, i32, i32
  }
  func.func @transform_3(%arg0: i32) -> (i32, i32, i32) {
    %c0_i32 = arith.constant 0 : i32
    %c0_i32_0 = arith.constant 0 : i32
    %c0_i32_1 = arith.constant 0 : i32
    %c0_i32_2 = arith.constant 0 : i32
    return %c0_i32, %c0_i32_0, %c0_i32_1 : i32, i32, i32
  }
  func.func @transform_4(%arg0: i32) -> (i32, i32) {
    %c0_i32 = arith.constant 0 : i32
    %c0_i32_0 = arith.constant 0 : i32
    %c0_i32_1 = arith.constant 0 : i32
    return %c0_i32, %c0_i32_0 : i32, i32
  }
  func.func @transform_5(%arg0: i32) -> (i32, i32) {
    %c0_i32 = arith.constant 0 : i32
    %c0_i32_0 = arith.constant 0 : i32
    %c0_i32_1 = arith.constant 0 : i32
    return %c0_i32, %c0_i32_0 : i32, i32
  }
  func.func @transform_6(%arg0: i32) -> (i32, i32) {
    %c0_i32 = arith.constant 0 : i32
    %c0_i32_0 = arith.constant 0 : i32
    %c0_i32_1 = arith.constant 0 : i32
    return %c0_i32, %c0_i32_0 : i32, i32
  }
  func.func @transform_7(%arg0: i32) -> (i32, i32, i32) {
    %c0_i32 = arith.constant 0 : i32
    %c0_i32_0 = arith.constant 0 : i32
    %c0_i32_1 = arith.constant 0 : i32
    return %c0_i32, %arg0, %c0_i32_0 : i32, i32, i32
  }
  func.func @transform_8(%arg0: i32) -> (i32, i32, i32) {
    %c0_i32 = arith.constant 0 : i32
    %c0_i32_0 = arith.constant 0 : i32
    %c0_i32_1 = arith.constant 0 : i32
    return %c0_i32, %arg0, %c0_i32_0 : i32, i32, i32
  }
  func.func @transform_9(%arg0: i32) -> (i32, i32) {
    %c0_i32 = arith.constant 0 : i32
    %c0_i32_0 = arith.constant 0 : i32
    %c0_i32_1 = arith.constant 0 : i32
    return %c0_i32, %c0_i32_0 : i32, i32
  }
}

</mosaic_0001>

<bundles_post_ra>
// kernel: tpu_custom_call.1
= control target key start
LH: loop header
LB: loop body
LE: loop exit
PB: predicated region body
PF: predicated region fallthrough
CT: control target
= control target key end

     0   :  { %15 = vsyncpa [#allocation4], 0  ;;  %s2383_s0 = inlined_call_operand.hbm [shape: bf16[2,32,128], index: 0, kind: input, shape index: {}]   ;;  %s2384_s1 = inlined_call_operand.hbm [shape: s32[1,2,32], index: 1, kind: input, shape index: {}]   ;;  %s2385_s2 = inlined_call_operand.vmem [shape: f32[1,2,32], index: 2, kind: input, shape index: {}]   ;;  %s2386_s3 = inlined_call_operand.hbm [shape: f32[2,8,128], index: 3, kind: input, shape index: {}]   ;;  %s2387_s4 = inlined_call_operand.hbm [shape: bf16[128,128], index: 4, kind: input, shape index: {}]   ;;  %s2388_s5 = inlined_call_operand.hbm [shape: bf16[128,128], index: 5, kind: input, shape index: {}]   ;;  %s2389_s6 = inlined_call_operand.hbm [shape: bf16[128,256], index: 6, kind: input, shape index: {}]   ;;  %s2390_s7 = inlined_call_operand.hbm [shape: bf16[2,32,256], index: 7, kind: output, shape index: {0}]   ;;  %s2391_s8 = inlined_call_operand.hbm [shape: bf16[2,32,128], index: 8, kind: output, shape index: {1}]   ;;  %s2392_s9 = inlined_call_operand.hbm [shape: f32[1,1], index: 9, kind: output, shape index: {2}]  }
   0x1   :  { %16 = vsyncpa [#allocation7], 0 }
   0x2   :  { %17 = vsyncpa [#allocation10], 0 }
   0x3   :  { %18 = vsyncpa [#allocation13], 0 }
   0x4   :  { %19 = vsyncpa [#allocation5], 0 }
   0x5   :  { %20 = vsyncpa [#allocation16], 0  ;;  %s1896_s30 = smov [#allocation6]  }
   0x6   :  { %s39_s10 = sshll.u32 %s1896_s30, 4  ;;  %s40_s10 = int_to_ptr.vmem [resolvable:$true] %s39_s10 }
   0x7   :  { %s1712_s11 = scalar_lea.vmem %s40_s10, 32  ;;  %p1717_p1 = scmp.lt.s32.totalorder %s40_s10, %s40_s10 }
   0x8   :  { %p1713_p0 = scmp.ne.s32.totalorder %s40_s10, %s1712_s11  ;;  %p1718_p2 = scmp.lt.s32.totalorder %s1712_s11, %s1712_s11 }
   0xa   :  { %p1719_p3 = por %p1718_p2, %p1717_p1 }
   0xc   :  { %p1720_p4 = pnand %p1719_p3, %p1713_p0 }
   0xe   :  { %1723 = shalt.err (!%p1720_p4)
}
   0xf   :  { %42 = dma.hbm_to_vmem [thread:$0]  %s2384_s1, 32, %s40_s10, [#allocation7]  }
  0x10   :  { %s1897_s14 = smov [#allocation9]   ;;  %s1898_s16 = smov [#allocation3]  }
  0x11   :  { %s62_s15 = sshll.u32 %s1897_s14, 4  ;;  %s26_s17 = sshll.u32 %s1898_s16, 4  ;;  %s63_s15 = int_to_ptr.vmem [resolvable:$true] %s62_s15  ;;  %s27_s17 = int_to_ptr.vmem [resolvable:$true] %s26_s17 }
  0x12   :  { %s1732_s18 = scalar_lea.vmem %s63_s15, 1024  ;;  %p1737_p6 = scmp.lt.s32.totalorder %s63_s15, %s63_s15 }
  0x13   :  { %p1733_p5 = scmp.ne.s32.totalorder %s63_s15, %s1732_s18  ;;  %p1738_p7 = scmp.lt.s32.totalorder %s1732_s18, %s1732_s18 }
  0x15   :  { %p1739_p8 = por %p1738_p7, %p1737_p6 }
  0x17   :  { %p1740_p9 = pnand %p1739_p8, %p1733_p5 }
  0x19   :  { %1743 = shalt.err (!%p1740_p9)
}
  0x1a   :  { %s1899_s19 = smov 64   ;;  %s1900_s20 = smov 4  }
  0x1b   :  { %68 = dma.hbm_to_vmem [thread:$0]  %s2387_s4, 1024, %s63_s15, [#allocation10], %s1899_s19, %s1899_s19, %s1900_s20  }
  0x1c   :  { %s1752_s1 = scalar_lea.vmem %s27_s17, 512  ;;  %p1757_p11 = scmp.lt.s32.totalorder %s27_s17, %s27_s17 }
  0x1d   :  { %p1753_p10 = scmp.ne.s32.totalorder %s27_s17, %s1752_s1  ;;  %p1758_p12 = scmp.lt.s32.totalorder %s1752_s1, %s1752_s1 }
  0x1f   :  { %p1759_p13 = por %p1758_p12, %p1757_p11 }
  0x21   :  { %p1760_p0 = pnand %p1759_p13, %p1753_p10 }
  0x23   :  { %1763 = shalt.err (!%p1760_p0)
}
  0x24   :  { %32 = dma.hbm_to_vmem [thread:$0]  %s2383_s0, 512, %s27_s17, [#allocation4], %s1899_s19, %s1899_s19, %s1900_s20  }
  0x25   :  { %s1901_s25 = smov [#allocation8]  }
  0x26   :  { %s50_s26 = sshll.u32 %s1901_s25, 4  ;;  %s51_s26 = int_to_ptr.vmem [resolvable:$true] %s50_s26 }
  0x27   :  { %s1772_s27 = scalar_lea.vmem %s51_s26, 256  ;;  %p1777_p2 = scmp.lt.s32.totalorder %s51_s26, %s51_s26 }
  0x28   :  { %p1773_p1 = scmp.ne.s32.totalorder %s51_s26, %s1772_s27  ;;  %p1778_p3 = scmp.lt.s32.totalorder %s1772_s27, %s1772_s27 }
  0x2a   :  { %p1779_p4 = por %p1778_p3, %p1777_p2 }
  0x2c   :  { %p1780_p5 = pnand %p1779_p4, %p1773_p1 }
  0x2e   :  { %1783 = shalt.err (!%p1780_p5)
}
  0x2f   :  { %s1902_s4 = smov 128   ;;  %s1903_s28 = smov 8  }
  0x30   :  { %56 = dma.hbm_to_vmem [thread:$0]  %s2386_s3, 256, %s51_s26, [#allocation7], %s1902_s4, %s1902_s4, %s1903_s28  }
  0x31   :  { %s1904_s0 = smov [#allocation11]   ;;  %s1905_s11 = smov [#allocation12]  }
  0x32   :  { %s74_s10 = sshll.u32 %s1904_s0, 4  ;;  %s86_s12 = sshll.u32 %s1905_s11, 4  ;;  %s75_s10 = int_to_ptr.vmem [resolvable:$true] %s74_s10  ;;  %s87_s12 = int_to_ptr.vmem [resolvable:$true] %s86_s12 }
  0x33   :  { %s1792_s13 = scalar_lea.vmem %s75_s10, 1024  ;;  %p1797_p7 = scmp.lt.s32.totalorder %s75_s10, %s75_s10 }
  0x34   :  { %p1793_p6 = scmp.ne.s32.totalorder %s75_s10, %s1792_s13  ;;  %p1798_p8 = scmp.lt.s32.totalorder %s1792_s13, %s1792_s13 }
  0x36   :  { %p1799_p9 = por %p1798_p8, %p1797_p7 }
  0x38   :  { %p1800_p10 = pnand %p1799_p9, %p1793_p6 }
  0x3a   :  { %1803 = shalt.err (!%p1800_p10)
}
  0x3b   :  { %80 = dma.hbm_to_vmem [thread:$0]  %s2388_s5, 1024, %s75_s10, [#allocation10], %s1899_s19, %s1899_s19, %s1900_s20  }
  0x3c   :  { %s1812_s3 = scalar_lea.vmem %s87_s12, 2048  ;;  %p1817_p12 = scmp.lt.s32.totalorder %s87_s12, %s87_s12 }
  0x3d   :  { %p1813_p11 = scmp.ne.s32.totalorder %s87_s12, %s1812_s3  ;;  %p1818_p13 = scmp.lt.s32.totalorder %s1812_s3, %s1812_s3 }
  0x3f   :  { %p1819_p0 = por %p1818_p13, %p1817_p12 }
  0x41   :  { %p1820_p1 = pnand %p1819_p0, %p1813_p11 }
  0x43   :  { %1823 = shalt.err (!%p1820_p1)
}
  0x44   :  { %92 = dma.hbm_to_vmem [thread:$0]  %s2389_s6, 2048, %s87_s12, [#allocation13], %s1902_s4, %s1902_s4, %s1903_s28  }
  0x45   :  { %1884 = dma.done.wait [#allocation4], 512  }
  0x46   :  { %1885 = vsyncadd [#allocation4], 4294966784 }
  0x47   :  { %1886 = dma.done.wait [#allocation7], 288  }
  0x48   :  { %1887 = vsyncadd [#allocation7], 4294967008 }
  0x49   :  { %1888 = dma.done.wait [#allocation10], 2048  }
  0x4a   :  { %1889 = vsyncadd [#allocation10], 4294965248 }
  0x4b   :  { %1890 = dma.done.wait [#allocation13], 2048  }
  0x4c   :  { %1891 = vsyncadd [#allocation13], 4294965248  ;;  %v1995_v0 = vld [vmem:[#allocation9 + $0x38] sm:$0xff]   ;;  %v1997_v1 = vld [vmem:[#allocation9 + $0x30] sm:$0xff]   ;;  %v1906_v56 = vmov 0   ;;  %v1907_v57 = vmov 0.0   ;;  %v810_v58 = vlaneseq }
  0x4d   :  { %1442 = vmatprep.subr.bf16.mxu0 %v1995_v0  ;;  %v2002_v2 = vld [vmem:[#allocation9 + $0x28] sm:$0xff]   ;;  %v2005_v3 = vld [vmem:[#allocation9 + $0x20] sm:$0xff]   ;;  %v2009_v5 = vld [vmem:[#allocation9 + $0x18] sm:$0xff]   ;;  %1587 = vset.pattern.permute.xlu1 %v1906_v56  ;;  %vm1908_vm0 = vmmov 0   ;;  %s1910_s21 = smov [#allocation14]  }
  0x4e   :  { %1443 = vmatpush3.bf16.msra.mxu0 %v1995_v0  ;;  %v1596_v4 = vld [vmem:[#allocation3] sm:$0xff]   ;;  %v2012_v6 = vld [vmem:[#allocation11 + $0x38] sm:$0xff]   ;;  %v2030_v10 = vld [vmem:[#allocation9] sm:$0xff]   ;;  %1586 = vset.pattern.permute.xlu0 %v1906_v56  ;;  %v2079_v59 = vshrl.u32 %v810_v58, 7  ;;  %s1247_s22 = sshll.u32 %s1910_s21, 4  ;;  %s1248_s22 = int_to_ptr.vmem [resolvable:$true] %s1247_s22 }
  0x4f   :  { %1444 = vmatprep.subr.bf16.mxu0 %v1997_v1  ;;  %1458 = vmatprep.mubr.bf16.mxu0 %v1596_v4  ;;  %v2014_v7 = vld [vmem:[#allocation11 + $0x30] sm:$0xff]   ;;  %v2023_v9 = vld [vmem:[#allocation9 + $0x8] sm:$0xff]   ;;  %v1598_v12 = vld [vmem:[#allocation3 + $0x10] sm:$0xff]  }
  0x50   :  { %v2016_v8 = vld [vmem:[#allocation9 + $0x10] sm:$0xff]   ;;  %1466 = vmatprep.subr.bf16.mxu1 %v2012_v6  ;;  %v1599_v13 = vld [vmem:[#allocation3 + $0x18] sm:$0xff]   ;;  %v2043_v16 = vld [vmem:[#allocation11 + $0x18] sm:$0xff]   ;;  %v815_v63 = vsub.s32 0, %v2079_v59  ;;  %v834_v4 = vsub.s32 1, %v2079_v59 }
  0x51   :  { %1467 = vmatpush3.bf16.msra.mxu1 %v2012_v6  ;;  %v1597_v11 = vld [vmem:[#allocation3 + $0x8] sm:$0xff]   ;;  %v2035_v14 = vld [vmem:[#allocation11 + $0x28] sm:$0xff]   ;;  %v2039_v15 = vld [vmem:[#allocation11 + $0x20] sm:$0xff]  }
  0x52   :  { %1445 = vmatpush3.bf16.msra.mxu0 %v1997_v1  ;;  %1468 = vmatprep.subr.bf16.mxu1 %v2014_v7  ;;  %v2045_v17 = vld [vmem:[#allocation11 + $0x10] sm:$0xff]   ;;  %v2050_v18 = vld [vmem:[#allocation11 + $0x8] sm:$0xff]   ;;  %v2054_v19 = vld [vmem:[#allocation11] sm:$0xff]  }
  0x53   :  { %1446 = vmatprep.subr.bf16.mxu0 %v2002_v2  ;;  %v1608_v20 = vld [vmem:[#allocation12 + $0x70] ss:$8 sps:$4 sm:$0xff]   ;;  %v1610_v21 = vld [vmem:[#allocation12 + $0x74] ss:$8 sps:$4 sm:$0xff]   ;;  %v1613_v22 = vld [vmem:[#allocation12 + $0x64] ss:$8 sps:$4 sm:$0xff]  }
  0x54   :  { %v1611_v23 = vld [vmem:[#allocation12 + $0x60] ss:$8 sps:$4 sm:$0xff]   ;;  %v1616_v24 = vld [vmem:[#allocation12 + $0x54] ss:$8 sps:$4 sm:$0xff]   ;;  %v1614_v25 = vld [vmem:[#allocation12 + $0x50] ss:$8 sps:$4 sm:$0xff]  }
  0x55   :  { %1469 = vmatpush3.bf16.msra.mxu1 %v2014_v7  ;;  %v1619_v26 = vld [vmem:[#allocation12 + $0x44] ss:$8 sps:$4 sm:$0xff]   ;;  %v1617_v27 = vld [vmem:[#allocation12 + $0x40] ss:$8 sps:$4 sm:$0xff]   ;;  %v1622_v28 = vld [vmem:[#allocation12 + $0x34] ss:$8 sps:$4 sm:$0xff]  }
  0x56   :  { %1447 = vmatpush3.bf16.msra.mxu0 %v2002_v2  ;;  %1470 = vmatprep.subr.bf16.mxu1 %v2035_v14  ;;  %v1620_v29 = vld [vmem:[#allocation12 + $0x30] ss:$8 sps:$4 sm:$0xff]   ;;  %v1625_v30 = vld [vmem:[#allocation12 + $0x24] ss:$8 sps:$4 sm:$0xff]   ;;  %v1623_v31 = vld [vmem:[#allocation12 + $0x20] ss:$8 sps:$4 sm:$0xff]  }
  0x57   :  { %1448 = vmatprep.subr.bf16.mxu0 %v2005_v3  ;;  %v1628_v52 = vld [vmem:[#allocation12 + $0x14] ss:$8 sps:$4 sm:$0xff]   ;;  %v1626_v53 = vld [vmem:[#allocation12 + $0x10] ss:$8 sps:$4 sm:$0xff]   ;;  %v1631_v54 = vld [vmem:[#allocation12 + $0x4] ss:$8 sps:$4 sm:$0xff]  }
  0x58   :  { %v1629_v55 = vld [vmem:[#allocation12] ss:$8 sps:$4 sm:$0xff]   ;;  %v116_v60 = vld [vmem:[#allocation8] sm:$0xff]  ;;  %v117_v61 = vld [vmem:[#allocation8 + $0x8] sm:$0xff] }
  0x59   :  { %1471 = vmatpush3.bf16.msra.mxu1 %v2035_v14  ;;  %v809_v62 = vld [vmem:[#allocation6] sm:$0x3] }
  0x5a   :  { %1449 = vmatpush3.bf16.msra.mxu0 %v2005_v3  ;;  %1472 = vmatprep.subr.bf16.mxu1 %v2039_v15 }
  0x5b   :  { %1450 = vmatprep.subr.bf16.mxu0 %v2009_v5 }
  0x5d   :  { %1473 = vmatpush3.bf16.msra.mxu1 %v2039_v15 }
  0x5e   :  { %1451 = vmatpush3.bf16.msra.mxu0 %v2009_v5  ;;  %1474 = vmatprep.subr.bf16.mxu1 %v2043_v16 }
  0x5f   :  { %1452 = vmatprep.subr.bf16.mxu0 %v2016_v8 }
  0x61   :  { %1475 = vmatpush3.bf16.msra.mxu1 %v2043_v16 }
  0x62   :  { %1453 = vmatpush3.bf16.msra.mxu0 %v2016_v8  ;;  %1476 = vmatprep.subr.bf16.mxu1 %v2045_v17 }
  0x63   :  { %1454 = vmatprep.subr.bf16.mxu0 %v2023_v9 }
  0x65   :  { %1477 = vmatpush3.bf16.msra.mxu1 %v2045_v17 }
  0x66   :  { %1455 = vmatpush3.bf16.msra.mxu0 %v2023_v9  ;;  %1478 = vmatprep.subr.bf16.mxu1 %v2050_v18 }
  0x67   :  { %1456 = vmatprep.subr.bf16.mxu0 %v2030_v10 }
  0x69   :  { %1479 = vmatpush3.bf16.msra.mxu1 %v2050_v18 }
  0x6a   :  { %1457 = vmatpush3.bf16.msra.mxu0 %v2030_v10  ;;  %1480 = vmatprep.subr.bf16.mxu1 %v2054_v19 }
  0x6b   :  { %560 = vmatprep.subr.bf16.mxu0 %v1610_v21 }
  0x6d   :  { %1459 = vmatmul.mubr.bf16.vlgmr.msra.gmra.mxu0 %v1597_v11  ;;  %1481 = vmatpush3.bf16.msra.mxu1 %v2054_v19  ;;  %v1068_v11 = vpack.c.bf16 %v117_v61, %v116_v60 }
  0x6e   :  { %1462 = vmatprep.mubr.bf16.mxu0 %v1598_v12  ;;  %561 = vmatpush1.bf16.msra.mxu0 %v1608_v20  ;;  %v2087_v12 = vrot.slane %v809_v62, %v815_v63 }
  0x6f   :  { %562 = vmatprep.subr.bf16.mxu0 %v1613_v22  ;;  %1490 = vmatprep.subr.bf16.mxu1 %v1907_v57 }
  0x70   :  { %818 = vbcast.lane.b32.xlu0 %v2087_v12, 256  ;;  %822 = vbcast.lane.b32.xlu1 %v2087_v12, 264 }
  0x72   :  { %563 = vmatpush1.bf16.msra.mxu0 %v1611_v23 }
  0x73   :  { %564 = vmatprep.subr.bf16.mxu0 %v1616_v24 }
  0x74   :  { %826 = vbcast.lane.b32.xlu0 %v2087_v12, 272 }
  0x75   :  { %1463 = vmatmul.mubr.bf16.gmra.mxu0 %v1599_v13  ;;  %v835_v13 = vrot.slane %v809_v62, %v834_v4 }
  0x76   :  { %565 = vmatpush1.bf16.msra.mxu0 %v1614_v25  ;;  %592 = vmatprep.mubr.bf16.mxu0 %v1906_v56 }
  0x77   :  { %566 = vmatprep.subr.bf16.mxu0 %v1619_v26  ;;  %837 = vbcast.lane.b32.xlu1 %v835_v13, 256 }
  0x7a   :  { %567 = vmatpush1.bf16.msra.mxu0 %v1617_v27 }
  0x7b   :  { %568 = vmatprep.subr.bf16.mxu0 %v1622_v28  ;;  %841 = vbcast.lane.b32.xlu1 %v835_v13, 264 }
  0x7e   :  { %569 = vmatpush1.bf16.msra.mxu0 %v1620_v29 }
  0x7f   :  { %570 = vmatprep.subr.bf16.mxu0 %v1625_v30  ;;  %845 = vbcast.lane.b32.xlu1 %v835_v13, 272 }
  0x82   :  { %571 = vmatpush1.bf16.msra.mxu0 %v1623_v31 }
  0x83   :  { %572 = vmatprep.subr.bf16.mxu0 %v1628_v52  ;;  %849 = vbcast.lane.b32.xlu1 %v835_v13, 280 }
  0x86   :  { %573 = vmatpush1.bf16.msra.mxu0 %v1626_v53 }
  0x87   :  { %574 = vmatprep.subr.bf16.mxu0 %v1631_v54 }
  0x8a   :  { %575 = vmatpush1.bf16.msra.mxu0 %v1629_v55 }
  0x8b   :  { %1510 = vmatprep.subr.bf16.mxu0 %v1907_v57 }
 0x12d   :  { %v1460_v32 = vpop.f32.mrf.mxu0 }
 0x12f   :  { %v284_v33 = vpop.f32.mrf.mxu0 }
 0x130   :  { %1632 = vtanh.f32 %v284_v33 }
 0x131   :  { %v1461_v34 = vpop.f32.mrf.mxu0 }
 0x132   :  { %1634 = vtanh.f32 %v1461_v34 }
 0x133   :  { %v287_v35 = vpop.f32.mrf.mxu0 }
 0x134   :  { %1636 = vtanh.f32 %v287_v35 }
 0x135   :  { %1638 = vtanh.f32 %v1460_v32  ;;  %v1464_v36 = vpop.f32.mrf.mxu0 }
 0x136   :  { %1640 = vtanh.f32 %v1464_v36 }
 0x137   :  { %v300_v37 = vpop.f32.mrf.mxu0 }
 0x138   :  { %1642 = vtanh.f32 %v300_v37 }
 0x139   :  { %v1465_v38 = vpop.f32.mrf.mxu0 }
 0x13a   :  { %1644 = vtanh.f32 %v1465_v38 }
 0x13b   :  { %v303_v39 = vpop.f32.mrf.mxu0 }
 0x13c   :  { %1646 = vtanh.f32 %v303_v39 }
 0x13d   :  { %v1633_v40 = vpop.eup %1632 }
 0x13f   :  { %v1635_v41 = vpop.eup %1634 }
 0x141   :  { %v1637_v42 = vpop.eup %1636 }
 0x142   :  { %v1639_v43 = vpop.eup %1638  ;;  %v323_v44 = vpack.c.bf16 %v1637_v42, %v1633_v40 }
 0x143   :  { %v324_v45 = vpack.c.bf16 %v1635_v41, %v1639_v43  ;;  %v1641_v46 = vpop.eup %1640 }
 0x144   :  { %1482 = vmatprep.mubr.bf16.mxu1 %v323_v44 }
 0x145   :  { %1483 = vmatmul.mubr.bf16.vlgmr.msra.gmra.mxu1 %v324_v45  ;;  %v1643_v47 = vpop.eup %1642 }
 0x146   :  { %1491 = vmatpush3.bf16.msra.mxu1 %v1995_v0 }
 0x147   :  { %v1645_v48 = vpop.eup %1644  ;;  %1492 = vmatprep.subr.bf16.mxu1 %v1907_v57 }
 0x148   :  { %v326_v50 = vpack.c.bf16 %v1645_v48, %v1641_v46  ;;  %v907_v48 = vld [vmem:[%s2385_s2] sm:$0x3]  ;;  %s1909_s2 = smov [#allocation15]  }
 0x149   :  { %v1647_v49 = vpop.eup %1646  ;;  %v2219_v55 = vrot.slane %v907_v48, %v834_v4  ;;  %s1259_s18 = sshll.u32 %s1909_s2, 4  ;;  %s1260_s18 = int_to_ptr.vmem [resolvable:$true] %s1259_s18 }
 0x14a   :  { %v325_v51 = vpack.c.bf16 %v1647_v49, %v1643_v47  ;;  %1493 = vmatpush3.bf16.msra.mxu1 %v1997_v1  ;;  %s1824_s1 = scalar_lea.vmem %s1260_s18, 512  ;;  %p1829_p3 = scmp.lt.s32.totalorder %s1260_s18, %s1260_s18 }
 0x14b   :  { %1494 = vmatprep.subr.bf16.mxu1 %v1907_v57  ;;  %p1825_p2 = scmp.ne.s32.totalorder %s1260_s18, %s1824_s1  ;;  %p1830_p4 = scmp.lt.s32.totalorder %s1824_s1, %s1824_s1 }
 0x14c   :  { %1486 = vmatprep.mubr.bf16.mxu1 %v325_v51  ;;  %v2208_v51 = vrot.slane %v907_v48, %v815_v63  ;;  %v819_v63 = vpop.permute.xlu0 %818 }
 0x14d   :  { %1487 = vmatmul.mubr.bf16.gmra.mxu1 %v326_v50  ;;  %p1831_p5 = por %p1830_p4, %p1829_p3 }
 0x14e   :  { %1495 = vmatpush3.bf16.msra.mxu1 %v2002_v2  ;;  %1506 = vmatprep.mubr.msk.bf16.mxu1 %vm1908_vm0, %v1907_v57 }
 0x14f   :  { %1496 = vmatprep.subr.bf16.mxu1 %v1907_v57  ;;  %p1832_p6 = pnand %p1831_p5, %p1825_p2 }
 0x150   :  { %v827_v4 = vpop.permute.xlu0 %826 }
 0x152   :  { %1497 = vmatpush3.bf16.msra.mxu1 %v2005_v3 }
 0x153   :  { %1498 = vmatprep.subr.bf16.mxu1 %v1907_v57 }
 0x156   :  { %1499 = vmatpush3.bf16.msra.mxu1 %v2009_v5 }
 0x157   :  { %1500 = vmatprep.subr.bf16.mxu1 %v1907_v57 }
 0x15a   :  { %1501 = vmatpush3.bf16.msra.mxu1 %v2016_v8 }
 0x15b   :  { %1502 = vmatprep.subr.bf16.mxu1 %v1907_v57 }
 0x15e   :  { %1503 = vmatpush3.bf16.msra.mxu1 %v2023_v9 }
 0x15f   :  { %1504 = vmatprep.subr.bf16.mxu1 %v1907_v57 }
 0x162   :  { %1505 = vmatpush3.bf16.msra.mxu1 %v2030_v10 }
 0x163   :  { %1530 = vmatprep.subr.bf16.mxu1 %v1907_v57 }
 0x165   :  { %1507 = vmatmul.mubr.bf16.vlgmr.msra.gmra.mxu1 %v1068_v11 }
 0x166   :  { %1531 = vmatpush3.bf16.msra.mxu1 %v1995_v0  ;;  %1546 = vmatprep.mubr.msk.bf16.mxu1 %vm1908_vm0, %v1907_v57 }
 0x167   :  { %1532 = vmatprep.subr.bf16.mxu1 %v1907_v57 }
 0x16a   :  { %1533 = vmatpush3.bf16.msra.mxu1 %v1997_v1 }
 0x16b   :  { %1534 = vmatprep.subr.bf16.mxu1 %v1907_v57 }
 0x16e   :  { %1535 = vmatpush3.bf16.msra.mxu1 %v2002_v2 }
 0x16f   :  { %1536 = vmatprep.subr.bf16.mxu1 %v1907_v57 }
 0x172   :  { %1537 = vmatpush3.bf16.msra.mxu1 %v2005_v3 }
 0x173   :  { %1538 = vmatprep.subr.bf16.mxu1 %v1907_v57 }
 0x176   :  { %1539 = vmatpush3.bf16.msra.mxu1 %v2009_v5 }
 0x177   :  { %1540 = vmatprep.subr.bf16.mxu1 %v1907_v57 }
 0x17a   :  { %1541 = vmatpush3.bf16.msra.mxu1 %v2016_v8 }
 0x17b   :  { %1542 = vmatprep.subr.bf16.mxu1 %v1907_v57 }
 0x17e   :  { %1543 = vmatpush3.bf16.msra.mxu1 %v2023_v9 }
 0x17f   :  { %1544 = vmatprep.subr.bf16.mxu1 %v1907_v57 }
 0x182   :  { %1545 = vmatpush3.bf16.msra.mxu1 %v2030_v10 }
 0x205   :  { %v1484_v0 = vpop.f32.mrf.mxu1 }
 0x207   :  { %v409_v1 = vpop.f32.mrf.mxu1 }
 0x209   :  { %v1485_v2 = vpop.f32.mrf.mxu1 }
 0x20a   :  { %v441_v3 = vpack.c.bf16 %v1485_v2, %v1484_v0 }
 0x20b   :  { %v412_v20 = vpop.f32.mrf.mxu1 }
 0x20c   :  { %1379 = vst [vmem:[#allocation15 + $0x8] sm:$0xff] %v441_v3   ;;  %v440_v21 = vpack.c.bf16 %v412_v20, %v409_v1 }
 0x20d   :  { %v1488_v5 = vpop.f32.mrf.mxu1 }
 0x20e   :  { %1363 = vst [vmem:[#allocation15] sm:$0xff] %v440_v21   ;;  %593 = vmatmul.mubr.bf16.vlgmr.msra.gmra.mxu0 %v440_v21 }
 0x20f   :  { %602 = vmatprep.mubr.bf16.mxu0 %v1906_v56  ;;  %v425_v8 = vpop.f32.mrf.mxu1  ;;  %1511 = vmatpush3.bf16.msra.mxu0 %v2012_v6 }
 0x210   :  { %1512 = vmatprep.subr.bf16.mxu0 %v1907_v57 }
 0x211   :  { %v1489_v9 = vpop.f32.mrf.mxu1 }
 0x212   :  { %v443_v22 = vpack.c.bf16 %v1489_v9, %v1488_v5 }
 0x213   :  { %v428_v10 = vpop.f32.mrf.mxu1  ;;  %1513 = vmatpush3.bf16.msra.mxu0 %v2014_v7 }
 0x214   :  { %1381 = vst [vmem:[#allocation15 + $0x18] sm:$0xff] %v443_v22   ;;  %v442_v23 = vpack.c.bf16 %v428_v10, %v425_v8  ;;  %1514 = vmatprep.subr.bf16.mxu0 %v1907_v57 }
 0x216   :  { %603 = vmatmul.mubr.bf16.gmra.mxu0 %v441_v3  ;;  %1380 = vst [vmem:[#allocation15 + $0x10] sm:$0xff] %v442_v23  }
 0x217   :  { %612 = vmatprep.mubr.bf16.mxu0 %v1906_v56  ;;  %1515 = vmatpush3.bf16.msra.mxu0 %v2035_v14 }
 0x218   :  { %1516 = vmatprep.subr.bf16.mxu0 %v1907_v57 }
 0x21b   :  { %1517 = vmatpush3.bf16.msra.mxu0 %v2039_v15 }
 0x21c   :  { %1518 = vmatprep.subr.bf16.mxu0 %v1907_v57 }
 0x21e   :  { %613 = vmatmul.mubr.bf16.gmra.mxu0 %v442_v23 }
 0x21f   :  { %622 = vmatprep.mubr.bf16.mxu0 %v1906_v56  ;;  %1519 = vmatpush3.bf16.msra.mxu0 %v2043_v16 }
 0x220   :  { %1520 = vmatprep.subr.bf16.mxu0 %v1907_v57 }
 0x223   :  { %1521 = vmatpush3.bf16.msra.mxu0 %v2045_v17 }
 0x224   :  { %1522 = vmatprep.subr.bf16.mxu0 %v1907_v57 }
 0x225   :  { %v1103_v24 = vpop.f32.mrf.mxu1 }
 0x226   :  { %623 = vmatmul.mubr.bf16.gmra.mxu0 %v443_v22  ;;  %1648 = vtanh.f32 %v1103_v24 }
 0x227   :  { %1523 = vmatpush3.bf16.msra.mxu0 %v2050_v18  ;;  %1526 = vmatprep.mubr.msk.bf16.mxu0 %vm1908_vm0, %v1907_v57  ;;  %v1508_v25 = vpop.f32.mrf.mxu1 }
 0x228   :  { %1524 = vmatprep.subr.bf16.mxu0 %v1907_v57 }
 0x229   :  { %v1106_v26 = vpop.f32.mrf.mxu1 }
 0x22a   :  { %1650 = vtanh.f32 %v1106_v26 }
 0x22b   :  { %1525 = vmatpush3.bf16.msra.mxu0 %v2054_v19  ;;  %v1509_v27 = vpop.f32.mrf.mxu1 }
 0x22c   :  { %1550 = vmatprep.subr.bf16.mxu0 %v1907_v57 }
 0x233   :  { %v1649_v28 = vpop.eup %1648 }
 0x237   :  { %v1651_v29 = vpop.eup %1650 }
 0x238   :  { %v1112_v30 = vpack.c.bf16 %v1651_v29, %v1649_v28 }
 0x23a   :  { %1527 = vmatmul.mubr.bf16.vlgmr.msra.gmra.mxu0 %v1112_v30 }
 0x23b   :  { %1551 = vmatpush3.bf16.msra.mxu0 %v2012_v6  ;;  %1566 = vmatprep.mubr.msk.bf16.mxu0 %vm1908_vm0, %v1907_v57  ;;  %v2152_v6 = vand.u32 127, %v810_v58 }
 0x23c   :  { %1552 = vmatprep.subr.bf16.mxu0 %v1907_v57 }
 0x23d   :  { %vm851_vm4 = vcmp.eq.s32.totalorder %v2152_v6, %v819_v63  ;;  %vm855_vm8 = vcmp.eq.s32.totalorder %v2152_v6, %v827_v4 }
 0x23f   :  { %1553 = vmatpush3.bf16.msra.mxu0 %v2014_v7 }
 0x240   :  { %1554 = vmatprep.subr.bf16.mxu0 %v1907_v57 }
 0x243   :  { %1555 = vmatpush3.bf16.msra.mxu0 %v2035_v14  ;;  %v823_v14 = vpop.permute.xlu1 %822 }
 0x244   :  { %1556 = vmatprep.subr.bf16.mxu0 %v1907_v57  ;;  %vm853_vm1 = vcmp.eq.s32.totalorder %v2152_v6, %v823_v14 }
 0x247   :  { %1557 = vmatpush3.bf16.msra.mxu0 %v2039_v15  ;;  %v2157_v15 = vadd.s32 128, %v2152_v6  ;;  %v2231_v62 = vpop.permute.xlu1 %837 }
 0x248   :  { %1558 = vmatprep.subr.bf16.mxu0 %v1907_v57  ;;  %vm859_vm13 = vcmp.eq.s32.totalorder %v2152_v6, %v2231_v62 }
 0x249   :  { %vm854_vm2 = vcmp.eq.s32.totalorder %v2157_v15, %v823_v14  ;;  %vm852_vm3 = vcmp.eq.s32.totalorder %v2157_v15, %v819_v63  ;;  %vm856_vm5 = vcmp.eq.s32.totalorder %v2157_v15, %v827_v4  ;;  %vm860_vm14 = vcmp.eq.s32.totalorder %v2157_v15, %v2231_v62 }
 0x24b   :  { %1559 = vmatpush3.bf16.msra.mxu0 %v2043_v16  ;;  %v842_v0 = vpop.permute.xlu1 %841 }
 0x24c   :  { %1560 = vmatprep.subr.bf16.mxu0 %v1907_v57  ;;  %vm861_vm6 = vcmp.eq.s32.totalorder %v2152_v6, %v842_v0  ;;  %vm862_vm7 = vcmp.eq.s32.totalorder %v2157_v15, %v842_v0 }
 0x24f   :  { %1561 = vmatpush3.bf16.msra.mxu0 %v2045_v17  ;;  %v846_v22 = vpop.permute.xlu1 %845 }
 0x250   :  { %1562 = vmatprep.subr.bf16.mxu0 %v1907_v57  ;;  %vm863_vm9 = vcmp.eq.s32.totalorder %v2152_v6, %v846_v22  ;;  %vm864_vm10 = vcmp.eq.s32.totalorder %v2157_v15, %v846_v22 }
 0x253   :  { %1563 = vmatpush3.bf16.msra.mxu0 %v2050_v18  ;;  %v850_v30 = vpop.permute.xlu1 %849 }
 0x254   :  { %1564 = vmatprep.subr.bf16.mxu0 %v1907_v57  ;;  %vm865_vm11 = vcmp.eq.s32.totalorder %v2152_v6, %v850_v30  ;;  %vm866_vm12 = vcmp.eq.s32.totalorder %v2157_v15, %v850_v30 }
 0x257   :  { %1565 = vmatpush3.bf16.msra.mxu0 %v2054_v19 }
 0x2ce   :  { %v2154_v7 = vpop.f32.mrf.mxu0 }
 0x2d0   :  { %v2159_v16 = vpop.f32.mrf.mxu0 }
 0x2d1   :  { %v1351_v17 = vpack.c.bf16 %v2159_v16, %v2154_v7  ;;  %v689_v18 = vmax.f32 %v2154_v7, %v2159_v16  ;;  %v868_v13 = vsel %vm852_vm3, %v2159_v16, 0.0  ;;  %vm1019_vm3 = vcmask 195712  }
 0x2d2   :  { %v2167_v19 = vpop.f32.mrf.mxu0 }
 0x2d3   :  { %681 = vst [vmem:[#allocation14] sm:$0xff] %v1351_v17  ;;  %690 = vmax.xlane.f32.xlu0 %v689_v18  ;;  %v869_v34 = vsel %vm853_vm1, %v2167_v19, 0.0  ;;  %vm120_vm1 = vcmask 0  }
 0x2d4   :  { %v2169_v31 = vpop.f32.mrf.mxu0  ;;  %121 = vst.msk [vmem:[#allocation17] sm:$0x1] %vm120_vm1, %v1907_v57 }
 0x2d5   :  { %v1352_v32 = vpack.c.bf16 %v2169_v31, %v2167_v19  ;;  %v692_v33 = vmax.f32 %v2167_v19, %v2169_v31  ;;  %v870_v35 = vsel %vm854_vm2, %v2169_v31, 0.0  ;;  %vm1012_vm2 = vcmask 130112  }
 0x2d6   :  { %v2177_v36 = vpop.f32.mrf.mxu0  ;;  %v886_v37 = vadd.f32 %v870_v35, %v869_v34 }
 0x2d7   :  { %682 = vst [vmem:[#allocation14 + $0x8] sm:$0xff] %v1352_v32  ;;  %693 = vmax.xlane.f32.xlu0 %v692_v33  ;;  %v871_v5 = vsel %vm855_vm8, %v2177_v36, 0.0 }
 0x2d8   :  { %887 = vadd.xlane.f32.xlu1 %v886_v37  ;;  %v2179_v38 = vpop.f32.mrf.mxu0 }
 0x2d9   :  { %v1353_v39 = vpack.c.bf16 %v2179_v38, %v2177_v36  ;;  %v695_v40 = vmax.f32 %v2177_v36, %v2179_v38  ;;  %v872_v3 = vsel %vm856_vm5, %v2179_v38, 0.0  ;;  %vm1047_vm5 = vcmask 1041409  }
 0x2da   :  { %v2185_v41 = vpop.f32.mrf.mxu0  ;;  %v889_v8 = vadd.f32 %v872_v3, %v871_v5 }
 0x2db   :  { %683 = vst [vmem:[#allocation14 + $0x10] sm:$0xff] %v1353_v39  ;;  %696 = vmax.xlane.f32.xlu0 %v695_v40 }
 0x2dc   :  { %v2187_v42 = vpop.f32.mrf.mxu0 }
 0x2dd   :  { %v1354_v43 = vpack.c.bf16 %v2187_v42, %v2185_v41  ;;  %v698_v44 = vmax.f32 %v2185_v41, %v2187_v42 }
 0x2de   :  { %v2193_v45 = vpop.f32.mrf.mxu0 }
 0x2df   :  { %684 = vst [vmem:[#allocation14 + $0x18] sm:$0xff] %v1354_v43  ;;  %699 = vmax.xlane.f32.xlu0 %v698_v44 }
 0x2e0   :  { %v2195_v46 = vpop.f32.mrf.mxu0 }
 0x2e1   :  { %v1355_v47 = vpack.c.bf16 %v2195_v46, %v2193_v45  ;;  %v701_v11 = vmax.f32 %v2193_v45, %v2195_v46 }
 0x2e2   :  { %v2202_v49 = vpop.f32.mrf.mxu0 }
 0x2e3   :  { %685 = vst [vmem:[#allocation14 + $0x20] sm:$0xff] %v1355_v47  ;;  %v877_v20 = vsel %vm861_vm6, %v2202_v49, 0.0  ;;  %vm1050_vm6 = vcmask 254976  }
 0x2e4   :  { %v2204_v50 = vpop.f32.mrf.mxu0 }
 0x2e5   :  { %v1356_v52 = vpack.c.bf16 %v2204_v50, %v2202_v49  ;;  %v704_v2 = vmax.f32 %v2202_v49, %v2204_v50  ;;  %v878_v21 = vsel %vm862_vm7, %v2204_v50, 0.0 }
 0x2e6   :  { %v2212_v53 = vpop.f32.mrf.mxu0  ;;  %v898_v9 = vadd.f32 %v878_v21, %v877_v20 }
 0x2e7   :  { %686 = vst [vmem:[#allocation14 + $0x28] sm:$0xff] %v1356_v52  ;;  %v879_v23 = vsel %vm863_vm9, %v2212_v53, 0.0 }
 0x2e8   :  { %v2214_v54 = vpop.f32.mrf.mxu0 }
 0x2e9   :  { %926 = vbcast.lane.b32.xlu1 %v2208_v51, 264  ;;  %v1357_v56 = vpack.c.bf16 %v2214_v54, %v2212_v53  ;;  %v707_v10 = vmax.f32 %v2212_v53, %v2214_v54  ;;  %v880_v24 = vsel %vm864_vm10, %v2214_v54, 0.0 }
 0x2ea   :  { %v2223_v58 = vpop.f32.mrf.mxu0  ;;  %v901_v25 = vadd.f32 %v880_v24, %v879_v23 }
 0x2eb   :  { %687 = vst [vmem:[#allocation14 + $0x30] sm:$0xff] %v1357_v56  ;;  %v881_v18 = vsel %vm865_vm11, %v2223_v58, 0.0 }
 0x2ec   :  { %v2225_v60 = vpop.f32.mrf.mxu0 }
 0x2ed   :  { %941 = vbcast.lane.b32.xlu1 %v2219_v55, 256  ;;  %v1358_v61 = vpack.c.bf16 %v2225_v60, %v2223_v58  ;;  %v710_v26 = vmax.f32 %v2223_v58, %v2225_v60  ;;  %v882_v32 = vsel %vm866_vm12, %v2225_v60, 0.0 }
 0x2ee   :  { %v904_v33 = vadd.f32 %v882_v32, %v881_v18 }
 0x2ef   :  { %688 = vst [vmem:[#allocation14 + $0x38] sm:$0xff] %v1358_v61 }
 0x2f5   :  { %830 = vbcast.lane.b32.xlu0 %v2087_v12, 280  ;;  %v867_v12 = vsel %vm851_vm4, %v2154_v7, 0.0  ;;  %vm1026_vm4 = vcmask 261312  }
 0x2f6   :  { %v883_v1 = vadd.f32 %v868_v13, %v867_v12 }
 0x2fa   :  { %v1147_v27 = vpop.f32.mrf.mxu0 }
 0x2fc   :  { %v1528_v28 = vpop.f32.mrf.mxu0 }
 0x2fe   :  { %v1150_v29 = vpop.f32.mrf.mxu0 }
 0x2ff   :  { %v1154_v14 = vpack.c.bf16 %v1150_v29, %v1147_v27 }
 0x300   :  { %v1529_v17 = vpop.f32.mrf.mxu0 }
 0x301   :  { %1547 = vmatmul.mubr.bf16.vlgmr.msra.gmra.mxu1 %v1154_v14 }
 0x311   :  { %702 = vmax.xlane.f32.xlu1 %v701_v11 }
 0x314   :  { %884 = vadd.xlane.f32.xlu0 %v883_v1  ;;  %v875_v1 = vsel %vm859_vm13, %v2193_v45, 0.0 }
 0x315   :  { %705 = vmax.xlane.f32.xlu1 %v704_v2  ;;  %v876_v2 = vsel %vm860_vm14, %v2195_v46, 0.0 }
 0x316   :  { %v895_v62 = vadd.f32 %v876_v2, %v875_v1 }
 0x318   :  { %890 = vadd.xlane.f32.xlu0 %v889_v8 }
 0x319   :  { %899 = vadd.xlane.f32.xlu1 %v898_v9 }
 0x31d   :  { %708 = vmax.xlane.f32.xlu1 %v707_v10 }
 0x321   :  { %902 = vadd.xlane.f32.xlu1 %v901_v25 }
 0x325   :  { %711 = vmax.xlane.f32.xlu1 %v710_v26 }
 0x32e   :  { %922 = vbcast.lane.b32.xlu0 %v2208_v51, 256 }
 0x336   :  { %945 = vbcast.lane.b32.xlu1 %v2219_v55, 264 }
 0x35a   :  { %905 = vadd.xlane.f32.xlu1 %v904_v33 }
 0x35c   :  { %v2263_v34 = vpop.xlane.xlu0 %690 }
 0x35d   :  { %v713_v35 = vsub.f32 %v2154_v7, %v2263_v34  ;;  %v714_v37 = vsub.f32 %v2159_v16, %v2263_v34 }
 0x35f   :  { %v729_v39 = vmul.f32 1.442695, %v713_v35  ;;  %v731_v47 = vmul.f32 1.442695, %v714_v37 }
 0x360   :  { %v2269_v40 = vpop.xlane.xlu0 %693 }
 0x361   :  { %v715_v43 = vsub.f32 %v2167_v19, %v2269_v40  ;;  %v716_v44 = vsub.f32 %v2169_v31, %v2269_v40  ;;  %1652 = vpow2.f32 %v729_v39  ;;  %v2298_v24 = vpop.xlane.xlu1 %887 }
 0x363   :  { %v733_v48 = vmul.f32 1.442695, %v715_v43  ;;  %v735_v52 = vmul.f32 1.442695, %v716_v44 }
 0x364   :  { %v2275_v56 = vpop.xlane.xlu0 %696 }
 0x365   :  { %1654 = vpow2.f32 %v733_v48  ;;  %v717_v7 = vsub.f32 %v2177_v36, %v2275_v56  ;;  %v718_v16 = vsub.f32 %v2179_v38, %v2275_v56  ;;  %v2300_v25 = vpop.permute.xlu1 %926 }
 0x366   :  { %1656 = vpow2.f32 %v735_v52 }
 0x367   :  { %1658 = vpow2.f32 %v731_v47  ;;  %v737_v61 = vmul.f32 1.442695, %v717_v7  ;;  %v739_v19 = vmul.f32 1.442695, %v718_v16 }
 0x368   :  { %v2281_v63 = vpop.xlane.xlu0 %699 }
 0x369   :  { %v719_v31 = vsub.f32 %v2185_v41, %v2281_v63  ;;  %v720_v4 = vsub.f32 %v2187_v42, %v2281_v63  ;;  %1660 = vpow2.f32 %v737_v61  ;;  %v2302_v26 = vpop.permute.xlu1 %941 }
 0x36a   :  { %1662 = vpow2.f32 %v739_v19 }
 0x36b   :  { %v741_v11 = vmul.f32 1.442695, %v719_v31  ;;  %v743_v13 = vmul.f32 1.442695, %v720_v4 }
 0x36c   :  { %v831_v36 = vpop.permute.xlu0 %830 }
 0x36d   :  { %vm857_vm15 = vcmp.eq.s32.totalorder %v2152_v6, %v831_v36  ;;  %vm858_vm0 = vcmp.eq.s32.totalorder %v2157_v15, %v831_v36  ;;  %1664 = vpow2.f32 %v741_v11 }
 0x36e   :  { %v873_v38 = vsel %vm857_vm15, %v2185_v41, 0.0  ;;  %v874_v0 = vsel %vm858_vm0, %v2187_v42, 0.0  ;;  %1666 = vpow2.f32 %v743_v13  ;;  %v1653_v3 = vpop.eup %1652 }
 0x36f   :  { %v892_v12 = vadd.f32 %v874_v0, %v873_v38 }
 0x371   :  { %893 = vadd.xlane.f32.xlu0 %v892_v12 }
 0x372   :  { %v1655_v20 = vpop.eup %1654 }
 0x373   :  { %v1657_v21 = vpop.eup %1656 }
 0x374   :  { %v1659_v5 = vpop.eup %1658  ;;  %v764_v8 = vadd.f32 %v1657_v21, %v1655_v20 }
 0x375   :  { %896 = vadd.xlane.f32.xlu0 %v895_v62  ;;  %v761_v9 = vadd.f32 %v1659_v5, %v1653_v3 }
 0x376   :  { %765 = vadd.xlane.f32.xlu1 %v764_v8  ;;  %v1661_v15 = vpop.eup %1660 }
 0x377   :  { %v1663_v41 = vpop.eup %1662 }
 0x378   :  { %v767_v22 = vadd.f32 %v1663_v41, %v1661_v15 }
 0x379   :  { %762 = vadd.xlane.f32.xlu0 %v761_v9 }
 0x37a   :  { %v1665_v42 = vpop.eup %1664 }
 0x37b   :  { %v1667_v10 = vpop.eup %1666 }
 0x37c   :  { %v770_v23 = vadd.f32 %v1667_v10, %v1665_v42 }
 0x37d   :  { %768 = vadd.xlane.f32.xlu0 %v767_v22 }
 0x381   :  { %771 = vadd.xlane.f32.xlu0 %v770_v23 }
 0x387   :  { %949 = vbcast.lane.b32.xlu1 %v2219_v55, 272 }
 0x39a   :  { %v2304_v27 = vpop.xlane.xlu1 %702 }
 0x39b   :  { %v721_v28 = vsub.f32 %v2193_v45, %v2304_v27  ;;  %v722_v29 = vsub.f32 %v2195_v46, %v2304_v27 }
 0x39d   :  { %v745_v30 = vmul.f32 1.442695, %v721_v28  ;;  %v747_v14 = vmul.f32 1.442695, %v722_v29 }
 0x39e   :  { %v2310_v17 = vpop.xlane.xlu1 %705 }
 0x39f   :  { %1668 = vpow2.f32 %v745_v30  ;;  %v723_v18 = vsub.f32 %v2202_v49, %v2310_v17  ;;  %v724_v32 = vsub.f32 %v2204_v50, %v2310_v17 }
 0x3a0   :  { %1670 = vpow2.f32 %v747_v14 }
 0x3a1   :  { %v749_v33 = vmul.f32 1.442695, %v723_v18  ;;  %v751_v35 = vmul.f32 1.442695, %v724_v32 }
 0x3a2   :  { %v2316_v37 = vpop.xlane.xlu1 %899 }
 0x3a3   :  { %1672 = vpow2.f32 %v749_v33 }
 0x3a4   :  { %1674 = vpow2.f32 %v751_v35 }
 0x3a6   :  { %v2318_v45 = vpop.xlane.xlu1 %708 }
 0x3a7   :  { %v725_v46 = vsub.f32 %v2212_v53, %v2318_v45  ;;  %v726_v39 = vsub.f32 %v2214_v54, %v2318_v45 }
 0x3a9   :  { %v753_v43 = vmul.f32 1.442695, %v725_v46  ;;  %v755_v49 = vmul.f32 1.442695, %v726_v39 }
 0x3aa   :  { %v2324_v44 = vpop.xlane.xlu1 %902 }
 0x3ab   :  { %1676 = vpow2.f32 %v753_v43 }
 0x3ac   :  { %v1669_v50 = vpop.eup %1668  ;;  %1678 = vpow2.f32 %v755_v49 }
 0x3ad   :  { %v1671_v47 = vpop.eup %1670 }
 0x3ae   :  { %v2326_v48 = vpop.xlane.xlu1 %711  ;;  %v773_v52 = vadd.f32 %v1671_v47, %v1669_v50 }
 0x3af   :  { %v727_v7 = vsub.f32 %v2223_v58, %v2326_v48  ;;  %v728_v53 = vsub.f32 %v2225_v60, %v2326_v48  ;;  %v885_v58 = vpop.xlane.xlu0 %884 }
 0x3b0   :  { %v1673_v16 = vpop.eup %1672  ;;  %774 = vadd.xlane.f32.xlu0 %v773_v52 }
 0x3b1   :  { %v1675_v54 = vpop.eup %1674  ;;  %v757_v61 = vmul.f32 1.442695, %v727_v7  ;;  %v759_v19 = vmul.f32 1.442695, %v728_v53 }
 0x3b2   :  { %v776_v31 = vadd.f32 %v1675_v54, %v1673_v16  ;;  %v2335_v1 = vpop.permute.xlu1 %945 }
 0x3b3   :  { %1680 = vpow2.f32 %v757_v61  ;;  %v891_v60 = vpop.xlane.xlu0 %890 }
 0x3b4   :  { %1682 = vpow2.f32 %v759_v19  ;;  %777 = vadd.xlane.f32.xlu0 %v776_v31 }
 0x3b7   :  { %v923_v12 = vpop.permute.xlu0 %922 }
 0x3b8   :  { %v1677_v4 = vpop.eup %1676 }
 0x3b9   :  { %v1679_v11 = vpop.eup %1678 }
 0x3ba   :  { %v779_v13 = vadd.f32 %v1679_v11, %v1677_v4 }
 0x3bc   :  { %780 = vadd.xlane.f32.xlu1 %v779_v13 }
 0x3c0   :  { %v1681_v36 = vpop.eup %1680 }
 0x3c1   :  { %v1683_v38 = vpop.eup %1682  ;;  %v1189_v41 = vpop.f32.mrf.mxu1 }
 0x3c2   :  { %v782_v0 = vadd.f32 %v1683_v38, %v1681_v36 }
 0x3c3   :  { %v1548_v10 = vpop.f32.mrf.mxu1 }
 0x3c4   :  { %783 = vadd.xlane.f32.xlu1 %v782_v0 }
 0x3c5   :  { %v1192_v28 = vpop.f32.mrf.mxu1 }
 0x3c7   :  { %v1549_v30 = vpop.f32.mrf.mxu1 }
 0x3ca   :  { %930 = vbcast.lane.b32.xlu0 %v2208_v51, 272 }
 0x3ce   :  { %934 = vbcast.lane.b32.xlu0 %v2208_v51, 280 }
 0x3d5   :  { %953 = vbcast.lane.b32.xlu1 %v2219_v55, 280 }
 0x3e3   :  { %v2339_v3 = vpop.xlane.xlu1 %905 }
 0x3fa   :  { %v2337_v2 = vpop.xlane.xlu0 %893 }
 0x3fe   :  { %v897_v20 = vpop.xlane.xlu0 %896 }
 0x3ff   :  { %v766_v21 = vpop.xlane.xlu1 %765 }
 0x400   :  { %1684 = vlog2.f32 %v766_v21 }
 0x402   :  { %v763_v62 = vpop.xlane.xlu0 %762 }
 0x403   :  { %1686 = vlog2.f32 %v763_v62  ;;  %v950_v43 = vpop.permute.xlu1 %949 }
 0x404   :  { %1688 = vtanh.f32 %v1189_v41 }
 0x405   :  { %1690 = vtanh.f32 %v1192_v28 }
 0x40d   :  { %v1685_v5 = vpop.eup %1684 }
 0x40e   :  { %v788_v8 = vmul.f32 0.6931472, %v1685_v5 }
 0x410   :  { %v1687_v15 = vpop.eup %1686  ;;  %v802_v51 = vadd.f32 %v788_v8, %v2269_v40  ;;  %v769_v40 = vpop.xlane.xlu0 %768 }
 0x411   :  { %v786_v55 = vmul.f32 0.6931472, %v1687_v15  ;;  %v1689_v14 = vpop.eup %1688  ;;  %1692 = vlog2.f32 %v769_v40 }
 0x412   :  { %v909_v9 = vsub.f32 %v802_v51, %v2298_v24  ;;  %v1691_v18 = vpop.eup %1690  ;;  %v1007_v51 = vadd.s32 4294967288, %v2152_v6 }
 0x413   :  { %v801_v42 = vadd.f32 %v786_v55, %v2263_v34  ;;  %v1198_v32 = vpack.c.bf16 %v1691_v18, %v1689_v14 }
 0x414   :  { %v964_v22 = vmul.f32 %v2300_v25, %v909_v9  ;;  %v772_v33 = vpop.xlane.xlu0 %771  ;;  %v1010_v41 = vsub.s32 %v1007_v51, %v2079_v59 }
 0x415   :  { %v908_v23 = vsub.f32 %v801_v42, %v885_v58  ;;  %1567 = vmatmul.mubr.bf16.vlgmr.msra.gmra.mxu0 %v1198_v32  ;;  %1694 = vlog2.f32 %v772_v33 }
 0x416   :  { %983 = vperm.xlu1 %1587, %v964_v22  }
 0x417   :  { %v963_v29 = vmul.f32 %v923_v12, %v908_v23 }
 0x419   :  { %980 = vperm.xlu0 %1586, %v963_v29  }
 0x41e   :  { %v1693_v24 = vpop.eup %1692 }
 0x41f   :  { %v790_v34 = vmul.f32 0.6931472, %v1693_v24 }
 0x421   :  { %v803_v35 = vadd.f32 %v790_v34, %v2275_v56 }
 0x422   :  { %v1695_v47 = vpop.eup %1694 }
 0x423   :  { %v910_v39 = vsub.f32 %v803_v35, %v891_v60  ;;  %v792_v53 = vmul.f32 0.6931472, %v1695_v47 }
 0x425   :  { %v804_v31 = vadd.f32 %v792_v53, %v2281_v63 }
 0x427   :  { %v911_v38 = vsub.f32 %v804_v31, %v2337_v2 }
 0x439   :  { %v775_v25 = vpop.xlane.xlu0 %774 }
 0x43a   :  { %1696 = vlog2.f32 %v775_v25 }
 0x43d   :  { %v778_v46 = vpop.xlane.xlu0 %777 }
 0x43e   :  { %1698 = vlog2.f32 %v778_v46 }
 0x441   :  { %v931_v49 = vpop.permute.xlu0 %930 }
 0x442   :  { %v965_v50 = vmul.f32 %v931_v49, %v910_v39 }
 0x444   :  { %986 = vperm.xlu1 %1587, %v965_v50  }
 0x445   :  { %v781_v52 = vpop.xlane.xlu1 %780  ;;  %v935_v36 = vpop.permute.xlu0 %934 }
 0x446   :  { %1700 = vlog2.f32 %v781_v52  ;;  %v966_v58 = vmul.f32 %v935_v36, %v911_v38 }
 0x447   :  { %v1697_v7 = vpop.eup %1696 }
 0x448   :  { %v794_v16 = vmul.f32 0.6931472, %v1697_v7 }
 0x44a   :  { %v805_v54 = vadd.f32 %v794_v16, %v2304_v27 }
 0x44b   :  { %v1699_v61 = vpop.eup %1698 }
 0x44c   :  { %v796_v19 = vmul.f32 0.6931472, %v1699_v61  ;;  %v912_v56 = vsub.f32 %v805_v54, %v897_v20 }
 0x44d   :  { %v784_v4 = vpop.xlane.xlu1 %783 }
 0x44e   :  { %v806_v11 = vadd.f32 %v796_v19, %v2310_v17  ;;  %1702 = vlog2.f32 %v784_v4  ;;  %v967_v13 = vmul.f32 %v2302_v26, %v912_v56 }
 0x450   :  { %992 = vperm.xlu1 %1587, %v967_v13   ;;  %v913_v0 = vsub.f32 %v806_v11, %v2316_v37 }
 0x451   :  { %v954_v62 = vpop.permute.xlu1 %953 }
 0x452   :  { %v968_v27 = vmul.f32 %v2335_v1, %v913_v0 }
 0x453   :  { %v1701_v60 = vpop.eup %1700 }
 0x454   :  { %v798_v12 = vmul.f32 0.6931472, %v1701_v60  ;;  %995 = vperm.xlu0 %1586, %v968_v27   ;;  %989 = vperm.xlu1 %1587, %v966_v58  }
 0x456   :  { %v807_v63 = vadd.f32 %v798_v12, %v2318_v45 }
 0x458   :  { %v914_v17 = vsub.f32 %v807_v63, %v2324_v44  ;;  %v1014_v44 = vadd.s32 4294967280, %v2152_v6 }
 0x45a   :  { %v969_v20 = vmul.f32 %v950_v43, %v914_v17  ;;  %v1017_v9 = vsub.s32 %v1014_v44, %v2079_v59 }
 0x45b   :  { %v1703_v21 = vpop.eup %1702 }
 0x45c   :  { %v800_v26 = vmul.f32 0.6931472, %v1703_v21  ;;  %998 = vperm.xlu0 %1586, %v969_v20  }
 0x45e   :  { %v808_v2 = vadd.f32 %v800_v26, %v2326_v48  ;;  %v1021_v48 = vadd.s32 4294967272, %v2152_v6 }
 0x460   :  { %v915_v37 = vsub.f32 %v808_v2, %v2339_v3  ;;  %v1005_v3 = vsub.s32 %v2152_v6, %v2079_v59  ;;  %v1024_v57 = vsub.s32 %v1021_v48, %v2079_v59 }
 0x462   :  { %v970_v5 = vmul.f32 %v954_v62, %v915_v37 }
 0x464   :  { %1001 = vperm.xlu0 %1586, %v970_v5  }
 0x491   :  { %v984_v1 = vpop.permute.xlu1 %983 }
 0x492   :  { %v1011_v30 = vrot.slane %v984_v1, %v1010_v41 }
 0x494   :  { %v981_v45 = vpop.permute.xlu0 %980 }
 0x495   :  { %v1006_v10 = vrot.slane %v981_v45, %v1005_v3 }
 0x497   :  { %v1013_v6 = vsel %vm1012_vm2, %v1011_v30, %v1006_v10 }
 0x4bf   :  { %v987_v8 = vpop.permute.xlu1 %986 }
 0x4c0   :  { %v1018_v28 = vrot.slane %v987_v8, %v1017_v9 }
 0x4c2   :  { %v1020_v33 = vsel %vm1019_vm3, %v1018_v28, %v1013_v6 }
 0x4cb   :  { %v993_v15 = vpop.permute.xlu1 %992 }
 0x4cc   :  { %v1031_v14 = vrot.slane %v993_v15, %v1005_v3 }
 0x4cf   :  { %v996_v55 = vpop.permute.xlu0 %995  ;;  %v990_v22 = vpop.permute.xlu1 %989 }
 0x4d0   :  { %v1035_v23 = vrot.slane %v996_v55, %v1010_v41  ;;  %v1025_v18 = vrot.slane %v990_v22, %v1024_v57 }
 0x4d2   :  { %v1036_v32 = vsel %vm1012_vm2, %v1035_v23, %v1031_v14  ;;  %v1027_v59 = vsel %vm1026_vm4, %v1025_v18, %v1020_v33 }
 0x4d5   :  { %v1233_v39 = vpop.f32.mrf.mxu0 }
 0x4d7   :  { %v999_v42 = vpop.permute.xlu0 %998  ;;  %v1568_v43 = vpop.f32.mrf.mxu0 }
 0x4d8   :  { %v1040_v29 = vrot.slane %v999_v42, %v1017_v9 }
 0x4d9   :  { %v1236_v49 = vpop.f32.mrf.mxu0 }
 0x4da   :  { %v1041_v34 = vsel %vm1019_vm3, %v1040_v29, %v1036_v32 }
 0x4db   :  { %v1569_v50 = vpop.f32.mrf.mxu0 }
 0x4df   :  { %v1002_v40 = vpop.permute.xlu0 %1001 }
 0x4e0   :  { %v1045_v24 = vrot.slane %v1002_v40, %v1024_v57 }
 0x4e2   :  { %v1046_v25 = vsel %vm1026_vm4, %v1045_v24, %v1041_v34 }
 0x4e3   :  { %v1048_v35 = vsel %vm1047_vm5, %v1046_v25, %v1027_v59 }
 0x4e4   :  { %v1051_v46 = vsel %vm1050_vm6, %v1048_v35, 0.0 }
 0x4e5   :  { %1052 = vadd.xlane.f32.xlu1 %v1051_v46 }
 0x4e6   :  { %1835 = shalt.err (!%p1832_p6)
}
 0x4e7   :  { %1265 = dma.vmem_to_hbm [thread:$0]  %s1260_s18, 512, %s2391_s8, [#allocation16], %s1899_s19, %s1899_s19, %s1900_s20  }
 0x4e8   :  { %s1844_s25 = scalar_lea.vmem %s1248_s22, 1024  ;;  %p1849_p8 = scmp.lt.s32.totalorder %s1248_s22, %s1248_s22 }
 0x4e9   :  { %p1845_p7 = scmp.ne.s32.totalorder %s1248_s22, %s1844_s25  ;;  %p1850_p9 = scmp.lt.s32.totalorder %s1844_s25, %s1844_s25 }
 0x4eb   :  { %p1851_p10 = por %p1850_p9, %p1849_p8 }
 0x4ed   :  { %p1852_p11 = pnand %p1851_p10, %p1845_p7 }
 0x4ef   :  { %1855 = shalt.err (!%p1852_p11)
}
 0x4f0   :  { %1253 = dma.vmem_to_hbm [thread:$0]  %s1248_s22, 1024, %s2390_s7, [#allocation5], %s1902_s4, %s1902_s4, %s1903_s28   ;;  %vm1054_vm7 = vcmask 1041408   ;;  %v1062_v19 = vld [vmem:[#allocation17] sm:$0x1] }
 0x4f1   :  { %s1911_s8 = smov [#allocation17]  }
 0x4f2   :  { %s1272_s19 = sshll.u32 %s1911_s8, 4  ;;  %s1273_s19 = int_to_ptr.vmem [resolvable:$true] %s1272_s19 }
 0x4f3   :  { %s1864_s20 = scalar_lea.vmem %s1273_s19, 16  ;;  %s1868_s29 = scalar_lea.vmem %s1273_s19, 32 }
 0x4f4   :  { %p1865_p12 = scmp.ne.s32.totalorder %s1273_s19, %s1864_s20  ;;  %p1869_p13 = scmp.lt.s32.totalorder %s1273_s19, %s1273_s19 }
 0x4f5   :  { %p1870_p0 = scmp.lt.s32.totalorder %s1868_s29, %s1864_s20 }
 0x4f7   :  { %p1871_p1 = por %p1870_p0, %p1869_p13 }
 0x4f9   :  { %p1872_p2 = pnand %p1871_p1, %p1865_p12 }
 0x56e   :  { %v1053_v47 = vpop.xlane.xlu1 %1052 }
 0x56f   :  { %v1055_v52 = vsel %vm1054_vm7, %v1053_v47, 0.0 }
 0x570   :  { %v1056_v7 = vrot.slane %v1055_v52, 4 }
 0x572   :  { %v1057_v53 = vadd.f32 %v1056_v7, %v1055_v52 }
 0x574   :  { %v1058_v16 = vrot.slane %v1057_v53, 2 }
 0x576   :  { %v1059_v54 = vadd.f32 %v1058_v16, %v1057_v53 }
 0x578   :  { %v1060_v61 = vrot.slane %v1059_v54, 1 }
 0x57a   :  { %v1061_v31 = vadd.f32 %v1060_v61, %v1059_v54 }
 0x57c   :  { %v1063_v56 = vadd.f32 %v1062_v19, %v1061_v31 }
 0x57e   :  { %1065 = vst.msk [vmem:[#allocation17] sm:$0x1] %vm120_vm1, %v1063_v56 }
 0x57f   :  { %1875 = shalt.err (!%p1872_p2)
}
 0x580   :  { %1275 = dma.vmem_to_hbm [thread:$0]  %s1273_s19, 16, %s2392_s9, [#allocation16]  }
 0x581   :  { %1892 = dma.done.wait [#allocation5], 1024  }
 0x582   :  { %1893 = vsyncadd [#allocation5], 4294966272 }
 0x583   :  { %1894 = dma.done.wait [#allocation16], 528  }
 0x584   :  { %1895 = vsyncadd [#allocation16], 4294966768 }
 0x585   :  { %1285 = vsyncpa [#allocation4], 1 }
 0x586   :  { %1286 = vsyncpa [#allocation7], 1 }
 0x587   :  { %1287 = vsyncpa [#allocation10], 1 }
 0x588   :  { %1288 = vsyncpa [#allocation13], 1 }
 0x589   :  { %1289 = vsyncpa [#allocation5], 1 }
 0x58a   :  { %1290 = vsyncpa [#allocation16], 1 }

</bundles_post_ra>
